<compile_context>
chip_gen: v5e
topology: v5e:2x2
jax: 0.10.0
libtpu: 0.0.40
codegen_flags: <defaults>
</compile_context>

<pallas_src>
import math

import numpy as np

import jax
import jax.numpy as jnp
from jax.experimental import pallas as pl
from jax.experimental.pallas import tpu as pltpu


def _round_up(x: int, m: int) -> int:
    return ((x + m - 1) // m) * m


def _sinusoidal_kernel(t_ref, w_ref, phase_ref, out_ref):
    # t_ref    : (TR, G)     f32 -- G timesteps per output row (G == 1 for the plain layout)
    # w_ref    : (G, L)      f32 -- resident per-lane frequency table (zero where the lane
    #                               does not belong to timestep g)
    # phase_ref: (1, L)      f32 -- resident 0 / pi/2 phase (cos(x) = sin(x + pi/2))
    # out_ref  : (TR, L)         -- single full-width store, [sin | cos] layout per dim-block
    g_count = t_ref.shape[1]
    # args[r, l] = sum_g t[r, g] * w[g, l] + phase[l]; only one g contributes per lane.
    args = phase_ref[...] + t_ref[:, 0:1] * w_ref[0:1, :]
    for g in range(1, g_count):  # statically unrolled, g_count is small (<= 128/dim)
        args = args + t_ref[:, g:g + 1] * w_ref[g:g + 1, :]
    out_ref[...] = jnp.sin(args).astype(out_ref.dtype)


def sinusoidal_position_embeddings(
    time: jax.Array,
    dim: int,
    *,
    out_dtype=jnp.float32,      # bfloat16 halves HBM writeback; math stays f32 either way
    block_rows: int = 1024,
    vmem_budget_bytes: int = 20 * 1024 * 1024,
) -> jax.Array:
    """Pallas equivalent of SinusoidalPositionEmbeddings(dim)(time).

    time: (B,) array of timesteps.  Returns (B, dim) = [sin(t*f) | cos(t*f)].
    """
    assert dim % 2 == 0 and dim >= 4, "dim must be even and >= 4 (half_dim-1 > 0)"
    half_dim = dim // 2
    b = time.shape[0]

    # Hoisted frequency table freq[j] = exp(-j * ln(10000) / (half_dim - 1)), host-side.
    scale = math.log(10000.0) / (half_dim - 1)
    freqs = np.exp(np.arange(half_dim, dtype=np.float64) * -scale).astype(np.float32)

    # Lane-dense packing applies when dim < 128 and dim divides 128.
    pack = (dim < 128) and (128 % dim == 0)

    if pack:
        group = 128 // dim            # timesteps per 128-lane output row
        lanes = 128
        b_pad = _round_up(b, group)
        rows = b_pad // group
        t = time.astype(jnp.float32)
        if b_pad != b:
            t = jnp.pad(t, (0, b_pad - b))
        t2 = t.reshape(rows, group)
        lane = np.arange(lanes)
        d = lane % dim                               # feature index within its dim-block
        owner = lane // dim                          # which of the `group` timesteps owns this lane
        fidx = np.where(d < half_dim, d, d - half_dim)
        w_np = np.zeros((group, lanes), np.float32)
        w_np[owner, lane] = freqs[fidx]
        phase_np = np.where(d < half_dim, 0.0, np.pi / 2.0).astype(np.float32).reshape(1, lanes)
    else:
        # TODO(synk): for dim < 128 with 128 % dim != 0 the single store is still lane-masked.
        group = 1
        lanes = dim
        b_pad = b
        rows = b
        t2 = time.astype(jnp.float32).reshape(b, 1)
        d = np.arange(dim)
        fidx = np.where(d < half_dim, d, d - half_dim)
        w_np = freqs[fidx].reshape(1, dim).astype(np.float32)
        phase_np = np.where(d < half_dim, 0.0, np.pi / 2.0).astype(np.float32).reshape(1, dim)

    w = jnp.asarray(w_np)
    phase = jnp.asarray(phase_np)

    # Row-tile choice:
    #  * VMEM cap: double-buffered output (2 * lanes * out_bytes) + ~2 f32 intermediates.
    #  * v7x megacore: force >= 2 grid steps whenever rows > 8 so both TCs get work.
    out_bytes = jnp.dtype(out_dtype).itemsize
    per_row_bytes = lanes * (2 * out_bytes + 2 * 4) + 2 * group * 4
    tr_cap = max(8, (vmem_budget_bytes // per_row_bytes) // 8 * 8)
    if rows <= 8:
        tr = rows
    else:
        tr = min(block_rows, tr_cap, _round_up(pl.cdiv(rows, 2), 8))
        tr = max(tr, 8)
    grid = (pl.cdiv(rows, tr),)

    out = pl.pallas_call(
        _sinusoidal_kernel,
        out_shape=jax.ShapeDtypeStruct((rows, lanes), out_dtype),
        grid_spec=pltpu.PrefetchScalarGridSpec(
            num_scalar_prefetch=0,
            grid=grid,
            in_specs=[
                pl.BlockSpec((tr, group), lambda i: (i, 0)),      # timesteps tile
                pl.BlockSpec((group, lanes), lambda i: (0, 0)),   # resident frequency table
                pl.BlockSpec((1, lanes), lambda i: (0, 0)),       # resident phase table
            ],
            out_specs=pl.BlockSpec((tr, lanes), lambda i: (i, 0)),
        ),
        compiler_params=pltpu.CompilerParams(
            dimension_semantics=("parallel",),
            vmem_limit_bytes=32 * 1024 * 1024,  # v5e scoped default is 16 MiB; 32 MiB is safe on all gens
        ),
    )(t2, w, phase)

    if pack:
        out = out.reshape(b_pad, dim)
        if b_pad != b:
            out = out[:b]
    return out


def _reference(time: jax.Array, dim: int) -> jax.Array:
    # Direct transcription of the PyTorch module, in f32.
    half_dim = dim // 2
    emb = math.log(10000.0) / (half_dim - 1)
    emb = jnp.exp(jnp.arange(half_dim, dtype=jnp.float32) * -emb)
    emb = time.astype(jnp.float32)[:, None] * emb[None, :]
    return jnp.concatenate([jnp.sin(emb), jnp.cos(emb)], axis=-1)


if __name__ == "__main__":
    key = jax.random.PRNGKey(0)
    batch = 8

    # Diffusion-style integer timesteps in [0, 1000), cast to float.
    time = jax.random.randint(key, (batch,), 0, 1000).astype(jnp.float32)

    # Tolerance note: arguments to sin/cos reach ~1e3, so ulp-level divergence between the
    # Mosaic and XLA transcendentals (and the cos = sin(x+pi/2) rewrite) shows up as
    # ~1e-4-scale absolute error; 5e-3 absolute is a robust bound for values in [-1, 1].

    # 1) dim < 128 -> lane-dense packed path (dim=32, G=4).
    out32 = jax.block_until_ready(sinusoidal_position_embeddings(time, 32))
    ref32 = _reference(time, 32)
    assert out32.shape == (batch, 32), out32.shape
    assert jnp.allclose(out32, ref32, atol=5e-3, rtol=1e-5), (
        f"dim=32 mismatch; max abs diff = {float(jnp.max(jnp.abs(out32 - ref32)))}"
    )

    # 2) dim < 128 with batch not a multiple of 128//dim -> exercises padding + slice.
    out32p = jax.block_until_ready(sinusoidal_position_embeddings(time[:6], 32))
    ref32p = _reference(time[:6], 32)
    assert out32p.shape == (6, 32), out32p.shape
    assert jnp.allclose(out32p, ref32p, atol=5e-3, rtol=1e-5), (
        f"dim=32 (padded batch) mismatch; max abs diff = "
        f"{float(jnp.max(jnp.abs(out32p - ref32p)))}"
    )

    # 3) dim >= 128 -> plain layout, already lane-dense (dim=128).
    out128 = jax.block_until_ready(sinusoidal_position_embeddings(time, 128))
    ref128 = _reference(time, 128)
    assert out128.shape == (batch, 128), out128.shape
    assert jnp.allclose(out128, ref128, atol=5e-3, rtol=1e-5), (
        f"dim=128 mismatch; max abs diff = {float(jnp.max(jnp.abs(out128 - ref128)))}"
    )

    # 4) bf16 output (halves HBM writeback); math stays f32, only the store is cast.
    out_bf16 = jax.block_until_ready(
        sinusoidal_position_embeddings(time, 128, out_dtype=jnp.bfloat16)
    )
    assert out_bf16.dtype == jnp.bfloat16
    assert jnp.allclose(out_bf16.astype(jnp.float32), ref128, atol=1e-2, rtol=1e-2), (
        "bf16 output mismatch; max abs diff = "
        f"{float(jnp.max(jnp.abs(out_bf16.astype(jnp.float32) - ref128)))}"
    )

    print("KERNEL_OK")
</pallas_src>

<mosaic_0001>
module attributes {stable_mosaic.version = 11 : i64} {
  func.func @_sinusoidal_kernel(%arg0: i32, %arg1: memref<2x4xf32, #tpu.memory_space<vmem>>, %arg2: memref<4x128xf32, #tpu.memory_space<vmem>>, %arg3: memref<1x128xf32, #tpu.memory_space<vmem>>, %arg4: memref<2x128xf32, #tpu.memory_space<vmem>>) attributes {dimension_semantics = [#tpu.dimension_semantics<parallel>], iteration_bounds = array<i64: 1>, scalar_prefetch = 0 : i64, scratch_operands = 0 : i64, tpu.core_type = #tpu.core_type<tc>, window_params = [{transform_indices = @transform_0, window_bounds = array<i64: 2, 4>}, {pipeline_mode = #tpu.pipeline_mode<synchronous>, transform_indices = @transform_1, window_bounds = array<i64: 4, 128>}, {pipeline_mode = #tpu.pipeline_mode<synchronous>, transform_indices = @transform_2, window_bounds = array<i64: 1, 128>}, {transform_indices = @transform_3, window_bounds = array<i64: 2, 128>}]} {
    %c0 = arith.constant 0 : index
    %c0_0 = arith.constant 0 : index
    %0 = vector.load %arg3[%c0, %c0_0] : memref<1x128xf32, #tpu.memory_space<vmem>>, vector<1x128xf32>
    %c0_1 = arith.constant 0 : index
    %c0_2 = arith.constant 0 : index
    %1 = vector.load %arg1[%c0_1, %c0_2] : memref<2x4xf32, #tpu.memory_space<vmem>>, vector<2x1xf32>
    %c0_3 = arith.constant 0 : index
    %c0_4 = arith.constant 0 : index
    %2 = vector.load %arg2[%c0_3, %c0_4] : memref<4x128xf32, #tpu.memory_space<vmem>>, vector<1x128xf32>
    %3 = vector.broadcast %1 : vector<2x1xf32> to vector<2x128xf32>
    %4 = vector.broadcast %2 : vector<1x128xf32> to vector<2x128xf32>
    %5 = arith.mulf %3, %4 : vector<2x128xf32>
    %6 = vector.broadcast %0 : vector<1x128xf32> to vector<2x128xf32>
    %7 = arith.addf %6, %5 : vector<2x128xf32>
    %c0_5 = arith.constant 0 : index
    %c1 = arith.constant 1 : index
    %8 = vector.load %arg1[%c0_5, %c1] : memref<2x4xf32, #tpu.memory_space<vmem>>, vector<2x1xf32>
    %c1_6 = arith.constant 1 : index
    %c0_7 = arith.constant 0 : index
    %9 = vector.load %arg2[%c1_6, %c0_7] : memref<4x128xf32, #tpu.memory_space<vmem>>, vector<1x128xf32>
    %10 = vector.broadcast %8 : vector<2x1xf32> to vector<2x128xf32>
    %11 = vector.broadcast %9 : vector<1x128xf32> to vector<2x128xf32>
    %12 = arith.mulf %10, %11 : vector<2x128xf32>
    %13 = arith.addf %7, %12 : vector<2x128xf32>
    %c0_8 = arith.constant 0 : index
    %c2 = arith.constant 2 : index
    %14 = vector.load %arg1[%c0_8, %c2] : memref<2x4xf32, #tpu.memory_space<vmem>>, vector<2x1xf32>
    %c2_9 = arith.constant 2 : index
    %c0_10 = arith.constant 0 : index
    %15 = vector.load %arg2[%c2_9, %c0_10] : memref<4x128xf32, #tpu.memory_space<vmem>>, vector<1x128xf32>
    %16 = vector.broadcast %14 : vector<2x1xf32> to vector<2x128xf32>
    %17 = vector.broadcast %15 : vector<1x128xf32> to vector<2x128xf32>
    %18 = arith.mulf %16, %17 : vector<2x128xf32>
    %19 = arith.addf %13, %18 : vector<2x128xf32>
    %c0_11 = arith.constant 0 : index
    %c3 = arith.constant 3 : index
    %20 = vector.load %arg1[%c0_11, %c3] : memref<2x4xf32, #tpu.memory_space<vmem>>, vector<2x1xf32>
    %c3_12 = arith.constant 3 : index
    %c0_13 = arith.constant 0 : index
    %21 = vector.load %arg2[%c3_12, %c0_13] : memref<4x128xf32, #tpu.memory_space<vmem>>, vector<1x128xf32>
    %22 = vector.broadcast %20 : vector<2x1xf32> to vector<2x128xf32>
    %23 = vector.broadcast %21 : vector<1x128xf32> to vector<2x128xf32>
    %24 = arith.mulf %22, %23 : vector<2x128xf32>
    %25 = arith.addf %19, %24 : vector<2x128xf32>
    %26 = math.sin %25 : vector<2x128xf32>
    %c0_14 = arith.constant 0 : index
    %c0_15 = arith.constant 0 : index
    %27 = vector.load %arg4[%c0_14, %c0_15] : memref<2x128xf32, #tpu.memory_space<vmem>>, vector<2x128xf32>
    tpu.vector_store %arg4[%c0_14, %c0_15], %26 {strides = array<i32>} : memref<2x128xf32, #tpu.memory_space<vmem>>, vector<2x128xf32>,
    return
  }
  func.func @transform_0(%arg0: i32) -> (i32, i32) {
    %c0_i32 = arith.constant 0 : i32
    %c0_i32_0 = arith.constant 0 : i32
    return %arg0, %c0_i32 : i32, i32
  }
  func.func @transform_1(%arg0: i32) -> (i32, i32) {
    %c0_i32 = arith.constant 0 : i32
    %c0_i32_0 = arith.constant 0 : i32
    %c0_i32_1 = arith.constant 0 : i32
    return %c0_i32, %c0_i32_0 : i32, i32
  }
  func.func @transform_2(%arg0: i32) -> (i32, i32) {
    %c0_i32 = arith.constant 0 : i32
    %c0_i32_0 = arith.constant 0 : i32
    %c0_i32_1 = arith.constant 0 : i32
    return %c0_i32, %c0_i32_0 : i32, i32
  }
  func.func @transform_3(%arg0: i32) -> (i32, i32) {
    %c0_i32 = arith.constant 0 : i32
    %c0_i32_0 = arith.constant 0 : i32
    return %arg0, %c0_i32 : i32, i32
  }
}

</mosaic_0001>

<bundles_post_ra>
// kernel: tpu_custom_call.1
= control target key start
LH: loop header
LB: loop body
LE: loop exit
PB: predicated region body
PF: predicated region fallthrough
CT: control target
= control target key end

     0   :  { %8 = vsyncpa [#allocation3], 0  ;;  %s465_s0 = inlined_call_operand.hbm [shape: f32[2,4], index: 0, kind: input, shape index: {}]   ;;  %s466_s1 = inlined_call_operand.hbm [shape: f32[4,128], index: 1, kind: input, shape index: {}]   ;;  %s467_s2 = inlined_call_operand.vmem [shape: f32[1,128], index: 2, kind: input, shape index: {}]   ;;  %s468_s3 = inlined_call_operand.hbm [shape: f32[2,128], index: 3, kind: output, shape index: {}]  }
   0x1   :  { %9 = vsyncpa [#allocation6], 0 }
   0x2   :  { %10 = vsyncpa [#allocation4], 0  ;;  %s16_s14 = sshll.u32 %s465_s0, 4  ;;  %s359_s15 = smov [#allocation2]   ;;  %s17_s14 = int_to_ptr.hbm [resolvable:$true] %s16_s14 }
   0x3   :  { %s18_s16 = sshll.u32 %s359_s15, 4  ;;  %s27_s19 = sshll.u32 %s466_s1, 4  ;;  %s19_s16 = int_to_ptr.vmem [resolvable:$true] %s18_s16  ;;  %s28_s19 = int_to_ptr.hbm [resolvable:$true] %s27_s19 }
   0x4   :  { %21 = dma.hbm_to_vmem [thread:$0]  %s17_s14, 32, %s19_s16, [#allocation3]  }
   0x5   :  { %s360_s20 = smov [#allocation5]  }
   0x6   :  { %s29_s21 = sshll.u32 %s360_s20, 4  ;;  %s30_s21 = int_to_ptr.vmem [resolvable:$true] %s29_s21 }
   0x7   :  { %32 = dma.hbm_to_vmem [thread:$0]  %s28_s19, 64, %s30_s21, [#allocation6]  }
   0x8   :  { %353 = dma.done.wait [#allocation3], 32  }
   0x9   :  { %354 = vsyncadd [#allocation3], 4294967264 }
   0xa   :  { %355 = dma.done.wait [#allocation6], 64  }
   0xb   :  { %356 = vsyncadd [#allocation6], 4294967232  ;;  %v361_v0 = vmov 0   ;;  %v362_v1 = vmov 2   ;;  %v44_v2 = vld [vmem:[#allocation2] sm:$0x3] }
   0xc   :  { %271 = vset.pattern.permute.xlu0 %v361_v0  ;;  %273 = vset.pattern.permute.xlu1 %v362_v1  ;;  %v363_v3 = vmov 1   ;;  %v364_v4 = vmov 3   ;;  %v276_v7 = vld [vmem:[#allocation5] ss:$0 sm:$0xff]  ;;  %v277_v9 = vld [vmem:[%s467_s2] ss:$0 sm:$0xff] }
   0xd   :  { %48 = vperm.xlu0 %271, %v44_v2   ;;  %67 = vperm.xlu1 %273, %v44_v2   ;;  %v279_v10 = vld [vmem:[#allocation5 + $0x1] ss:$0 sm:$0xff]  ;;  %v278_v11 = vld [vmem:[#allocation5 + $0x2] ss:$0 sm:$0xff]  ;;  %v280_v12 = vld [vmem:[#allocation5 + $0x3] ss:$0 sm:$0xff] }
   0xe   :  { %v365_v33 = vmov 683565275   ;;  %v366_v35 = vmov 2475754826   ;;  %v367_v38 = vmov 2131351028  }
   0xf   :  { %v368_v41 = vmov 2102212464   ;;  %v369_v44 = vmov 920167782   ;;  %v370_v47 = vmov 1326507024  }
  0x10   :  { %s371_s2 = smov [#allocation7]   ;;  %s244_s25 = sshll.u32 %s468_s3, 4  ;;  %s245_s25 = int_to_ptr.hbm [resolvable:$true] %s244_s25 }
  0x11   :  { %s242_s22 = sshll.u32 %s371_s2, 4  ;;  %s243_s22 = int_to_ptr.vmem [resolvable:$true] %s242_s22 }
  0x15   :  { %272 = vset.pattern.permute.xlu0 %v363_v3  ;;  %274 = vset.pattern.permute.xlu1 %v364_v4 }
  0x16   :  { %59 = vperm.xlu0 %272, %v44_v2   ;;  %75 = vperm.xlu1 %274, %v44_v2  }
  0x1e   :  { %275 = vset.pattern.permute.xlu0 %v364_v4 }
  0x7f   :  { %v49_v5 = vpop.permute.xlu0 %48  ;;  %v68_v6 = vpop.permute.xlu1 %67 }
  0x80   :  { %v52_v8 = vmul.f32 %v276_v7, %v49_v5  ;;  %v71_v17 = vmul.f32 %v278_v11, %v68_v6 }
  0x82   :  { %v56_v15 = vadd.f32 %v277_v9, %v52_v8 }
  0x88   :  { %v60_v13 = vpop.permute.xlu0 %59  ;;  %v76_v14 = vpop.permute.xlu1 %75 }
  0x89   :  { %v63_v16 = vmul.f32 %v279_v10, %v60_v13  ;;  %v79_v19 = vmul.f32 %v280_v12, %v76_v14 }
  0x8b   :  { %v64_v18 = vadd.f32 %v63_v16, %v56_v15 }
  0x8d   :  { %v72_v20 = vadd.f32 %v71_v17, %v64_v18 }
  0x8f   :  { %v402_v21 = vadd.f32 %v79_v19, %v72_v20 }
  0x91   :  { %v84_v22 = vand.u32 2139095040, %v402_v21  ;;  %v81_v25 = vand.u32 2147483647, %v402_v21  ;;  %vm83_vm12 = vcmp.lt.s32.totalorder %v402_v21, 0 }
  0x93   :  { %v85_v23 = vshrl.u32 %v84_v22, 23  ;;  %v88_v27 = vand.u32 8388607, %v81_v25  ;;  %vm82_vm13 = vcmp.le.f32.partialorder %v81_v25, 0.7853982 }
  0x95   :  { %v255_v24 = vadd.s32 4294967169, %v85_v23  ;;  %v89_v31 = vor.u32 8388608, %v88_v27 }
  0x97   :  { %v91_v26 = vadd.s32 1, %v255_v24  ;;  %v419_v54 = vshll.u32 %v89_v31, 8 }
  0x99   :  { %vm92_vm0 = vcmp.gt.s32.totalorder %v91_v26, 0  ;;  %v130_v63 = vand.u32 65535, %v419_v54  ;;  %v131_v5 = vshrl.u32 %v419_v54, 16 }
  0x9a   :  { %v93_v28 = vsel %vm92_vm0, %v91_v26, 0 }
  0x9b   :  { %v95_v29 = vand.u32 31, %v93_v28  ;;  %v410_v32 = vshrl.u32 %v93_v28, 5 }
  0x9d   :  { %v408_v30 = vsub.s32 32, %v95_v29  ;;  %v98_v34 = vshll.u32 %v365_v33, %v95_v29  ;;  %v101_v36 = vshll.u32 %v366_v35, %v95_v29  ;;  %v104_v40 = vshll.u32 %v367_v38, %v95_v29 }
  0x9e   :  { %v107_v43 = vshll.u32 %v368_v41, %v95_v29  ;;  %v110_v46 = vshll.u32 %v369_v44, %v95_v29  ;;  %vm113_vm1 = vcmp.lt.s32.totalorder %v410_v32, 1  ;;  %vm116_vm2 = vcmp.lt.s32.totalorder %v410_v32, 4 }
  0x9f   :  { %v99_v37 = vshrl.u32 %v366_v35, %v408_v30  ;;  %v102_v39 = vshrl.u32 %v367_v38, %v408_v30  ;;  %v105_v42 = vshrl.u32 %v368_v41, %v408_v30  ;;  %v108_v45 = vshrl.u32 %v369_v44, %v408_v30 }
  0xa0   :  { %v111_v48 = vshrl.u32 %v370_v47, %v408_v30  ;;  %vm115_vm3 = vcmp.lt.s32.totalorder %v410_v32, 3  ;;  %vm114_vm4 = vcmp.lt.s32.totalorder %v410_v32, 2  ;;  %v97_v27 = vshrl.u32 %v365_v33, %v408_v30 }
  0xa1   :  { %v100_v49 = vor.u32 %v99_v37, %v98_v34  ;;  %v103_v50 = vor.u32 %v102_v39, %v101_v36  ;;  %v106_v51 = vor.u32 %v105_v42, %v104_v40  ;;  %v109_v52 = vor.u32 %v108_v45, %v107_v43 }
  0xa2   :  { %v112_v53 = vor.u32 %v111_v48, %v110_v46 }
  0xa3   :  { %v121_v55 = vsel %vm113_vm1, %v100_v49, %v103_v50  ;;  %v125_v56 = vsel %vm113_vm1, %v103_v50, %v106_v51  ;;  %v122_v57 = vsel %vm116_vm2, %v109_v52, 920167782  ;;  %v118_v20 = vsel %vm116_vm2, %v106_v51, 2102212464 }
  0xa4   :  { %v126_v58 = vsel %vm116_vm2, %v112_v53, 1326507024  ;;  %v123_v59 = vsel %vm115_vm3, %v106_v51, %v122_v57  ;;  %v117_v37 = vsel %vm113_vm1, %v97_v27, %v100_v49  ;;  %v119_v38 = vsel %vm115_vm3, %v103_v50, %v118_v20 }
  0xa5   :  { %v127_v60 = vsel %vm115_vm3, %v109_v52, %v126_v58  ;;  %v124_v61 = vsel %vm114_vm4, %v121_v55, %v123_v59  ;;  %v120_v30 = vsel %vm114_vm4, %v117_v37, %v119_v38  ;;  %vm224_vm1 = vweird.f32 %v402_v21 }
  0xa6   :  { %v128_v62 = vsel %vm114_vm4, %v125_v56, %v127_v60  ;;  %v154_v3 = vand.u32 65535, %v124_v61  ;;  %v155_v4 = vshrl.u32 %v124_v61, 16  ;;  %v174_v45 = vmul.u32 %v419_v54, %v120_v30 }
  0xa7   :  { %v132_v1 = vand.u32 65535, %v128_v62  ;;  %v133_v2 = vshrl.u32 %v128_v62, 16 }
  0xa8   :  { %v157_v7 = vmul.u32 %v155_v4, %v130_v63  ;;  %v158_v9 = vmul.u32 %v154_v3, %v131_v5  ;;  %v156_v12 = vmul.u32 %v154_v3, %v130_v63  ;;  %v159_v15 = vmul.u32 %v155_v4, %v131_v5 }
  0xa9   :  { %v135_v6 = vmul.u32 %v133_v2, %v130_v63  ;;  %v136_v8 = vmul.u32 %v132_v1, %v131_v5  ;;  %v134_v10 = vmul.u32 %v132_v1, %v130_v63  ;;  %v137_v14 = vmul.u32 %v133_v2, %v131_v5 }
  0xaa   :  { %v160_v13 = vshll.u32 %v157_v7, 16  ;;  %v162_v17 = vshll.u32 %v158_v9, 16  ;;  %v161_v35 = vshrl.u32 %v157_v7, 16  ;;  %v163_v41 = vshrl.u32 %v158_v9, 16 }
  0xab   :  { %v138_v11 = vshll.u32 %v135_v6, 16  ;;  %v140_v16 = vshll.u32 %v136_v8, 16  ;;  %v139_v31 = vshrl.u32 %v135_v6, 16  ;;  %v141_v39 = vshrl.u32 %v136_v8, 16 }
  0xac   :  { %vm164_vm6 = vc.u32 %v156_v12, %v160_v13  ;;  %v166_v19 = vadd.s32 %v160_v13, %v156_v12 }
  0xad   :  { %vm142_vm5 = vc.u32 %v134_v10, %v138_v11  ;;  %v144_v18 = vadd.s32 %v138_v11, %v134_v10  ;;  %v165_v23 = vsel %vm164_vm6, 1, %v361_v0 }
  0xae   :  { %v143_v22 = vsel %vm142_vm5, 1, %v361_v0  ;;  %v167_v26 = vadd.s32 %v165_v23, %v159_v15  ;;  %vm168_vm8 = vc.u32 %v166_v19, %v162_v17  ;;  %v170_v43 = vadd.s32 %v166_v19, %v162_v17 }
  0xaf   :  { %v145_v24 = vadd.s32 %v143_v22, %v137_v14  ;;  %vm146_vm7 = vc.u32 %v144_v18, %v140_v16  ;;  %v169_v29 = vsel %vm168_vm8, 1, %v361_v0 }
  0xb0   :  { %v147_v28 = vsel %vm146_vm7, 1, %v361_v0  ;;  %v171_v36 = vadd.s32 %v169_v29, %v167_v26 }
  0xb1   :  { %v149_v34 = vadd.s32 %v147_v28, %v145_v24 }
  0xb2   :  { %v172_v42 = vadd.s32 %v171_v36, %v161_v35 }
  0xb3   :  { %v150_v40 = vadd.s32 %v149_v34, %v139_v31 }
  0xb4   :  { %v173_v0 = vadd.s32 %v172_v42, %v163_v41 }
  0xb5   :  { %v151_v33 = vadd.s32 %v150_v40, %v141_v39 }
  0xb6   :  { %v177_v44 = vadd.s32 1, %v173_v0 }
  0xb7   :  { %vm176_vm9 = vc.u32 %v151_v33, %v170_v43  ;;  %v175_v57 = vadd.s32 %v170_v43, %v151_v33 }
  0xb8   :  { %v178_v46 = vsel %vm176_vm9, %v177_v44, %v173_v0 }
  0xb9   :  { %v179_v47 = vadd.s32 %v178_v46, %v174_v45 }
  0xbb   :  { %v180_v48 = vadd.s32 536870912, %v179_v47 }
  0xbd   :  { %v181_v49 = vshrl.u32 %v180_v48, 30 }
  0xbf   :  { %v182_v51 = vshll.u32 %v181_v49, 30  ;;  %v205_v7 = vsub.s32 4, %v181_v49 }
  0xc1   :  { %v183_v50 = vsub.s32 %v179_v47, %v182_v51  ;;  %v206_v12 = vsel %vm83_vm12, %v205_v7, %v181_v49 }
  0xc2   :  { %v208_v15 = vsel %vm82_vm13, 0, %v206_v12 }
  0xc3   :  { %vm184_vm10 = vcmp.lt.s32.totalorder %v183_v50, 0  ;;  %v185_v52 = vsub.s32 0, %v183_v50  ;;  %v225_v20 = vadd.s32 3, %v208_v15 }
  0xc5   :  { %v186_v53 = vsel %vm184_vm10, %v185_v52, %v183_v50  ;;  %v226_v26 = vand.u32 3, %v225_v20 }
  0xc6   :  { %v187_v55 = vclz %v186_v53 }
  0xc7   :  { %vm228_vm14 = vcmp.eq.s32.totalorder %v226_v26, 0  ;;  %vm231_vm15 = vcmp.eq.s32.totalorder %v226_v26, 2  ;;  %vm227_vm0 = vcmp.lt.s32.totalorder %v226_v26, 2 }
  0xc8   :  { %v256_v56 = vadd.s32 4294967294, %v187_v55 }
  0xca   :  { %vm257_vm11 = vcmp.lt.s32.totalorder %v256_v56, 0 }
  0xcb   :  { %v190_v32 = vsel %vm257_vm11, 0, %v256_v56 }
  0xcc   :  { %v191_v58 = vsub.s32 32, %v190_v32  ;;  %v195_v59 = vsub.s32 4294967266, %v190_v32  ;;  %v192_v60 = vshll.u32 %v183_v50, %v190_v32 }
  0xce   :  { %v193_v61 = vshrl.u32 %v175_v57, %v191_v58  ;;  %v196_v62 = vadd.s32 127, %v195_v59 }
  0xd0   :  { %v194_v54 = vor.u32 %v193_v61, %v192_v60  ;;  %v197_v63 = vshll.u32 %v196_v62, 23 }
  0xd2   :  { %v198_v1 = vor.u32 4788187, %v197_v63  ;;  %v201_v3 = vcvt.s32.f32 %v194_v54 }
  0xd4   :  { %v199_v2 = vand.u32 2147483647, %v198_v1 }
  0xd6   :  { %v202_v4 = vmul.f32 %v201_v3, %v199_v2 }
  0xd8   :  { %v203_v5 = vxor.u32 2147483648, %v202_v4 }
  0xda   :  { %v204_v6 = vsel %vm83_vm12, %v203_v5, %v202_v4 }
  0xdb   :  { %v207_v8 = vsel %vm82_vm13, %v402_v21, %v204_v6 }
  0xdc   :  { %v209_v9 = vmul.f32 %v207_v8, %v207_v8 }
  0xde   :  { %v210_v10 = vmul.f32 -0.001358992, %v209_v9  ;;  %v217_v11 = vmul.f32 -0.00019511016, %v209_v9 }
  0xe0   :  { %v211_v13 = vadd.f32 0.041655596, %v210_v10  ;;  %v218_v14 = vadd.f32 0.008332121, %v217_v11 }
  0xe2   :  { %v212_v16 = vmul.f32 %v211_v13, %v209_v9  ;;  %v219_v17 = vmul.f32 %v218_v14, %v209_v9 }
  0xe4   :  { %v213_v18 = vadd.f32 -0.4999988, %v212_v16  ;;  %v220_v19 = vadd.f32 -0.16666654, %v219_v17 }
  0xe6   :  { %v214_v22 = vmul.f32 %v213_v18, %v209_v9  ;;  %v221_v23 = vmul.f32 %v220_v19, %v209_v9 }
  0xe8   :  { %v215_v24 = vadd.f32 1.0, %v214_v22  ;;  %v222_v25 = vadd.f32 1.0, %v221_v23 }
  0xea   :  { %v223_v27 = vmul.f32 %v222_v25, %v207_v8  ;;  %v232_v28 = vxor.u32 2147483648, %v215_v24 }
  0xec   :  { %v229_v29 = vxor.u32 2147483648, %v223_v27  ;;  %v233_v34 = vsel %vm231_vm15, %v232_v28, %v223_v27 }
  0xee   :  { %v230_v31 = vsel %vm228_vm14, %v215_v24, %v229_v29 }
  0xef   :  { %v234_v35 = vsel %vm227_vm0, %v230_v31, %v233_v34 }
  0xf0   :  { %v235_v36 = vsel %vm224_vm1, nan, %v234_v35 }
  0xf1   :  { %236 = vst [vmem:[#allocation7] sm:$0x3] %v235_v36 }
  0xf2   :  { %247 = dma.vmem_to_hbm [thread:$0]  %s243_s22, 32, %s245_s25, [#allocation4]  }
  0xf3   :  { %357 = dma.done.wait [#allocation4], 32  }
  0xf4   :  { %358 = vsyncadd [#allocation4], 4294967264 }
  0xf5   :  { %252 = vsyncpa [#allocation3], 1 }
  0xf6   :  { %253 = vsyncpa [#allocation6], 1 }
  0xf7   :  { %254 = vsyncpa [#allocation4], 1 }

</bundles_post_ra>
